<compile_context>
chip_gen: v6e
topology: v6e:2x2x1
jax: 0.10.0
libtpu: 0.0.40
codegen_flags: <defaults>
</compile_context>

<pallas_src>
import jax
import jax.numpy as jnp
from jax.experimental import pallas as pl
from jax.experimental.pallas import tpu as pltpu


def _round_up(n, m):
    return ((n + m - 1) // m) * m


def deepsurv_kernel(x_ref,
                    w1_ref, b1_ref,
                    w2_ref, b2_ref,
                    w3_ref, b3_ref,
                    out_ref):
    # x is bf16; all matmuls run bf16 on the MXU with f32 accumulation.
    x = x_ref[...]

    # ----- block 1: Linear(in_dim, 64) [+ folded BN] -> ELU(alpha=0.5) -----
    h = jnp.dot(x, w1_ref[...], preferred_element_type=jnp.float32) + b1_ref[...]
    h = jnp.where(h > 0, h, 0.5 * (jnp.exp(jnp.minimum(h, 0.0)) - 1.0))
    # Dropout(p=0.22): identity at inference.

    # ----- block 2: Linear(64, 128) [+ folded BN] -> SiLU -----
    h = jnp.dot(h.astype(jnp.bfloat16), w2_ref[...],
                preferred_element_type=jnp.float32) + b2_ref[...]
    h = h * pl.reciprocal(1.0 + jnp.exp(-h), approx=True)
    # Dropout(p=0.22): identity at inference.

    # ----- block 3: Linear(128, 256) [+ folded BN] -> LeakyReLU(0.01) -----
    h = jnp.dot(h.astype(jnp.bfloat16), w3_ref[...],
                preferred_element_type=jnp.float32) + b3_ref[...]
    h = jnp.where(h > 0, h, 0.01 * h)
    # Dropout(p=0.22): identity at inference.

    out_ref[...] = h.astype(out_ref.dtype)


def deepsurv_forward(x, params, *, tile_b=512):
    """x: (B, in_dim) float32; params: flat tuple (W, b, gamma, beta, rm, rv) x 3.

    Layer 3 (K=128, N=256) dominates FLOPs; the tiny K=16 / N=64 early layers
    are left fused as-is (restructuring them costs more than it saves).
    """
    B, in_dim = x.shape
    eps = jnp.float32(1e-5)

    # ---- Fold eval-mode BatchNorm into the Linear layers (exact) ----
    #   W' = W * (gamma * rsqrt(rv + eps));  b' = (b - rm) * that + beta
    fused = []
    for i in range(3):
        w, b, g, be, rm, rv = params[6 * i: 6 * i + 6]
        scale = g * jax.lax.rsqrt(rv + eps)                # (1, out)
        w_f = (w * scale).astype(jnp.bfloat16)             # (in, out) -> bf16 MXU
        b_f = ((b - rm) * scale + be).astype(jnp.float32)  # (1, out)  f32
        fused += [w_f, b_f]

    # ---- Batch tiling (pad B up to a multiple of the tile) ----
    # TILE_B is kept a multiple of 8 (sublane); default 512 amortizes the
    # ~0.35 us per-step overhead and fills the MXU M dimension while staying
    # far below v7x's 64 MiB VMEM (x tile 512x16 bf16 + out tile 512x256 f32
    # + all weights < 1 MiB double-buffered).
    tile_b = min(tile_b, _round_up(max(B, 1), 8))
    padded_b = _round_up(B, tile_b)
    if padded_b != B:
        x = jnp.pad(x, ((0, padded_b - B), (0, 0)))
    x = x.astype(jnp.bfloat16)
    grid = (padded_b // tile_b,)

    def resident(shape):
        # Whole-array block, same block index every grid step -> stays
        # VMEM-resident (no per-step weight DMA).
        return pl.BlockSpec(shape, lambda i: (0, 0))

    in_specs = [pl.BlockSpec((tile_b, in_dim), lambda i: (i, 0))]
    for w_f, b_f in zip(fused[0::2], fused[1::2]):
        in_specs += [resident(w_f.shape), resident(b_f.shape)]

    out = pl.pallas_call(
        deepsurv_kernel,
        out_shape=jax.ShapeDtypeStruct((padded_b, 256), jnp.float32),
        grid_spec=pltpu.PrefetchScalarGridSpec(
            num_scalar_prefetch=0,
            grid=grid,
            in_specs=in_specs,
            out_specs=pl.BlockSpec((tile_b, 256), lambda i: (i, 0)),
        ),
        compiler_params=pltpu.CompilerParams(
            dimension_semantics=("parallel",),       # v7x: shard tiles over 2 TCs
            vmem_limit_bytes=32 * 1024 * 1024,       # explicit, safe on all gens
        ),
    )(x, *fused)
    return out[:B]


def deepsurv_reference(x, params):
    """Pure-JAX f32 eval-mode reference (for a sanity check)."""
    eps = 1e-5
    acts = [
        lambda h: jnp.where(h > 0, h, 0.5 * (jnp.exp(jnp.minimum(h, 0.0)) - 1.0)),
        lambda h: h * jax.nn.sigmoid(h),
        lambda h: jnp.where(h > 0, h, 0.01 * h),
    ]
    h = x
    for i in range(3):
        w, b, g, be, rm, rv = params[6 * i: 6 * i + 6]
        h = h @ w + b
        h = (h - rm) * jax.lax.rsqrt(rv + eps) * g + be
        h = acts[i](h)
    return h


def init_params(key, in_dim):
    """Deterministic parameter init mirroring the PyTorch module's __init__."""
    dims = [(in_dim, 64), (64, 128), (128, 256)]
    params = []
    for (fan_in, fan_out) in dims:
        key, kw, kb = jax.random.split(key, 3)
        # init.kaiming_uniform_(weight, mode='fan_out', nonlinearity='relu'):
        #   gain = sqrt(2), bound = gain * sqrt(3 / fan_out) = sqrt(6 / fan_out)
        w_bound = float(jnp.sqrt(6.0 / fan_out))
        w_pt = jax.random.uniform(kw, (fan_out, fan_in), jnp.float32,
                                  -w_bound, w_bound)          # PyTorch (out, in)
        w = w_pt.T                                            # kernel uses (in, out)
        # nn.Linear default bias init: U(-1/sqrt(fan_in), 1/sqrt(fan_in))
        b_bound = float(1.0 / jnp.sqrt(fan_in))
        b = jax.random.uniform(kb, (1, fan_out), jnp.float32, -b_bound, b_bound)
        # BatchNorm1d defaults: gamma=1, beta=0, running_mean=0, running_var=1
        gamma = jnp.ones((1, fan_out), jnp.float32)
        beta = jnp.zeros((1, fan_out), jnp.float32)
        r_mean = jnp.zeros((1, fan_out), jnp.float32)
        r_var = jnp.ones((1, fan_out), jnp.float32)
        params += [w, b, gamma, beta, r_mean, r_var]
    return tuple(params)


if __name__ == "__main__":
    key = jax.random.PRNGKey(0)
    B, in_dim = 8, 16
    k_x, k_p = jax.random.split(key)
    x = jax.random.normal(k_x, (B, in_dim), jnp.float32)
    params = init_params(k_p, in_dim)

    out = deepsurv_forward(x, params)
    out = jax.block_until_ready(out)

    assert out.shape == (B, 256), out.shape
    assert bool(jnp.all(jnp.isfinite(out)))

    # Sanity check vs pure-JAX f32 reference (bf16 MXU + approx recip => loose tol).
    ref = deepsurv_reference(x, params)
    max_err = float(jnp.max(jnp.abs(out - ref)))
    assert max_err < 1e-1, f"max abs error {max_err}"

    print("KERNEL_OK")
</pallas_src>

<mosaic_0001>
module attributes {stable_mosaic.version = 11 : i64} {
  func.func @deepsurv_kernel(%arg0: i32, %arg1: memref<8x16xbf16, #tpu.memory_space<vmem>>, %arg2: memref<16x64xbf16, #tpu.memory_space<vmem>>, %arg3: memref<1x64xf32, #tpu.memory_space<vmem>>, %arg4: memref<64x128xbf16, #tpu.memory_space<vmem>>, %arg5: memref<1x128xf32, #tpu.memory_space<vmem>>, %arg6: memref<128x256xbf16, #tpu.memory_space<vmem>>, %arg7: memref<1x256xf32, #tpu.memory_space<vmem>>, %arg8: memref<8x256xf32, #tpu.memory_space<vmem>>) attributes {dimension_semantics = [#tpu.dimension_semantics<parallel>], iteration_bounds = array<i64: 1>, scalar_prefetch = 0 : i64, scratch_operands = 0 : i64, tpu.core_type = #tpu.core_type<tc>, window_params = [{transform_indices = @transform_0, window_bounds = array<i64: 8, 16>}, {pipeline_mode = #tpu.pipeline_mode<synchronous>, transform_indices = @transform_1, window_bounds = array<i64: 16, 64>}, {pipeline_mode = #tpu.pipeline_mode<synchronous>, transform_indices = @transform_2, window_bounds = array<i64: 1, 64>}, {pipeline_mode = #tpu.pipeline_mode<synchronous>, transform_indices = @transform_3, window_bounds = array<i64: 64, 128>}, {pipeline_mode = #tpu.pipeline_mode<synchronous>, transform_indices = @transform_4, window_bounds = array<i64: 1, 128>}, {pipeline_mode = #tpu.pipeline_mode<synchronous>, transform_indices = @transform_5, window_bounds = array<i64: 128, 256>}, {pipeline_mode = #tpu.pipeline_mode<synchronous>, transform_indices = @transform_6, window_bounds = array<i64: 1, 256>}, {transform_indices = @transform_7, window_bounds = array<i64: 8, 256>}]} {
    %c0 = arith.constant 0 : index
    %c0_0 = arith.constant 0 : index
    %0 = vector.load %arg1[%c0, %c0_0] : memref<8x16xbf16, #tpu.memory_space<vmem>>, vector<8x16xbf16>
    %c0_1 = arith.constant 0 : index
    %c0_2 = arith.constant 0 : index
    %1 = vector.load %arg2[%c0_1, %c0_2] : memref<16x64xbf16, #tpu.memory_space<vmem>>, vector<16x64xbf16>
    %cst = arith.constant dense<0.000000e+00> : vector<8x64xf32>
    %2 = tpu.matmul %0, %1, %cst {dimension_numbers = #tpu.dot_dimension_numbers<[1], [0], [0], [1], [0, 0, 1, 1], [], []>} : vector<8x16xbf16>, vector<16x64xbf16>, vector<8x64xf32> -> vector<8x64xf32>
    %c0_3 = arith.constant 0 : index
    %c0_4 = arith.constant 0 : index
    %3 = vector.load %arg3[%c0_3, %c0_4] : memref<1x64xf32, #tpu.memory_space<vmem>>, vector<1x64xf32>
    %4 = vector.broadcast %3 : vector<1x64xf32> to vector<8x64xf32>
    %5 = arith.addf %2, %4 : vector<8x64xf32>
    %cst_5 = arith.constant 0.000000e+00 : f32
    %6 = vector.broadcast %cst_5 : f32 to vector<8x64xf32>
    %7 = arith.cmpf ogt, %5, %6 : vector<8x64xf32>
    %cst_6 = arith.constant 0.000000e+00 : f32
    %8 = vector.broadcast %cst_6 : f32 to vector<8x64xf32>
    %9 = arith.minimumf %5, %8 : vector<8x64xf32>
    %10 = math.exp %9 : vector<8x64xf32>
    %cst_7 = arith.constant 1.000000e+00 : f32
    %11 = vector.broadcast %cst_7 : f32 to vector<8x64xf32>
    %12 = arith.subf %10, %11 : vector<8x64xf32>
    %cst_8 = arith.constant 5.000000e-01 : f32
    %13 = vector.broadcast %cst_8 : f32 to vector<8x64xf32>
    %14 = arith.mulf %13, %12 : vector<8x64xf32>
    %15 = arith.select %7, %5, %14 : vector<8x64xi1>, vector<8x64xf32>
    %16 = arith.truncf %15 : vector<8x64xf32> to vector<8x64xbf16>
    %c0_9 = arith.constant 0 : index
    %c0_10 = arith.constant 0 : index
    %17 = vector.load %arg4[%c0_9, %c0_10] : memref<64x128xbf16, #tpu.memory_space<vmem>>, vector<64x128xbf16>
    %cst_11 = arith.constant dense<0.000000e+00> : vector<8x128xf32>
    %18 = tpu.matmul %16, %17, %cst_11 {dimension_numbers = #tpu.dot_dimension_numbers<[1], [0], [0], [1], [0, 0, 1, 1], [], []>} : vector<8x64xbf16>, vector<64x128xbf16>, vector<8x128xf32> -> vector<8x128xf32>
    %c0_12 = arith.constant 0 : index
    %c0_13 = arith.constant 0 : index
    %19 = vector.load %arg5[%c0_12, %c0_13] : memref<1x128xf32, #tpu.memory_space<vmem>>, vector<1x128xf32>
    %20 = vector.broadcast %19 : vector<1x128xf32> to vector<8x128xf32>
    %21 = arith.addf %18, %20 : vector<8x128xf32>
    %cst_14 = arith.constant 0.000000e+00 : f32
    %22 = vector.broadcast %cst_14 : f32 to vector<8x128xf32>
    %23 = arith.subf %22, %21 : vector<8x128xf32>
    %24 = math.exp %23 : vector<8x128xf32>
    %cst_15 = arith.constant 1.000000e+00 : f32
    %25 = vector.broadcast %cst_15 : f32 to vector<8x128xf32>
    %26 = arith.addf %25, %24 : vector<8x128xf32>
    %27 = tpu.reciprocal %26 {approx = true} : vector<8x128xf32> -> vector<8x128xf32>
    %28 = arith.mulf %21, %27 : vector<8x128xf32>
    %29 = arith.truncf %28 : vector<8x128xf32> to vector<8x128xbf16>
    %c0_16 = arith.constant 0 : index
    %c0_17 = arith.constant 0 : index
    %30 = vector.load %arg6[%c0_16, %c0_17] : memref<128x256xbf16, #tpu.memory_space<vmem>>, vector<128x256xbf16>
    %cst_18 = arith.constant dense<0.000000e+00> : vector<8x256xf32>
    %31 = tpu.matmul %29, %30, %cst_18 {dimension_numbers = #tpu.dot_dimension_numbers<[1], [0], [0], [1], [0, 0, 1, 1], [], []>} : vector<8x128xbf16>, vector<128x256xbf16>, vector<8x256xf32> -> vector<8x256xf32>
    %c0_19 = arith.constant 0 : index
    %c0_20 = arith.constant 0 : index
    %32 = vector.load %arg7[%c0_19, %c0_20] : memref<1x256xf32, #tpu.memory_space<vmem>>, vector<1x256xf32>
    %33 = vector.broadcast %32 : vector<1x256xf32> to vector<8x256xf32>
    %34 = arith.addf %31, %33 : vector<8x256xf32>
    %cst_21 = arith.constant 0.000000e+00 : f32
    %35 = vector.broadcast %cst_21 : f32 to vector<8x256xf32>
    %36 = arith.cmpf ogt, %34, %35 : vector<8x256xf32>
    %cst_22 = arith.constant 0.00999999977 : f32
    %37 = vector.broadcast %cst_22 : f32 to vector<8x256xf32>
    %38 = arith.mulf %37, %34 : vector<8x256xf32>
    %39 = arith.select %36, %34, %38 : vector<8x256xi1>, vector<8x256xf32>
    %c0_23 = arith.constant 0 : index
    %c0_24 = arith.constant 0 : index
    %40 = vector.load %arg8[%c0_23, %c0_24] : memref<8x256xf32, #tpu.memory_space<vmem>>, vector<8x256xf32>
    tpu.vector_store %arg8[%c0_23, %c0_24], %39 {strides = array<i32>} : memref<8x256xf32, #tpu.memory_space<vmem>>, vector<8x256xf32>,
    return
  }
  func.func @transform_0(%arg0: i32) -> (i32, i32) {
    %c0_i32 = arith.constant 0 : i32
    %c0_i32_0 = arith.constant 0 : i32
    return %arg0, %c0_i32 : i32, i32
  }
  func.func @transform_1(%arg0: i32) -> (i32, i32) {
    %c0_i32 = arith.constant 0 : i32
    %c0_i32_0 = arith.constant 0 : i32
    %c0_i32_1 = arith.constant 0 : i32
    return %c0_i32, %c0_i32_0 : i32, i32
  }
  func.func @transform_2(%arg0: i32) -> (i32, i32) {
    %c0_i32 = arith.constant 0 : i32
    %c0_i32_0 = arith.constant 0 : i32
    %c0_i32_1 = arith.constant 0 : i32
    return %c0_i32, %c0_i32_0 : i32, i32
  }
  func.func @transform_3(%arg0: i32) -> (i32, i32) {
    %c0_i32 = arith.constant 0 : i32
    %c0_i32_0 = arith.constant 0 : i32
    %c0_i32_1 = arith.constant 0 : i32
    return %c0_i32, %c0_i32_0 : i32, i32
  }
  func.func @transform_4(%arg0: i32) -> (i32, i32) {
    %c0_i32 = arith.constant 0 : i32
    %c0_i32_0 = arith.constant 0 : i32
    %c0_i32_1 = arith.constant 0 : i32
    return %c0_i32, %c0_i32_0 : i32, i32
  }
  func.func @transform_5(%arg0: i32) -> (i32, i32) {
    %c0_i32 = arith.constant 0 : i32
    %c0_i32_0 = arith.constant 0 : i32
    %c0_i32_1 = arith.constant 0 : i32
    return %c0_i32, %c0_i32_0 : i32, i32
  }
  func.func @transform_6(%arg0: i32) -> (i32, i32) {
    %c0_i32 = arith.constant 0 : i32
    %c0_i32_0 = arith.constant 0 : i32
    %c0_i32_1 = arith.constant 0 : i32
    return %c0_i32, %c0_i32_0 : i32, i32
  }
  func.func @transform_7(%arg0: i32) -> (i32, i32) {
    %c0_i32 = arith.constant 0 : i32
    %c0_i32_0 = arith.constant 0 : i32
    return %arg0, %c0_i32 : i32, i32
  }
}

</mosaic_0001>

<bundles_post_ra>
// kernel: tpu_custom_call.1
= control target key start
LH: loop header
LB: loop body
LE: loop exit
PB: predicated region body
PF: predicated region fallthrough
CT: control target
= control target key end

     0   :  { %12 = vsyncpa [#allocation3], 0  ;;  %s695_s0 = inlined_call_operand.hbm [shape: bf16[8,16], index: 0, kind: input, shape index: {}]   ;;  %s696_s1 = inlined_call_operand.hbm [shape: bf16[16,64], index: 1, kind: input, shape index: {}]   ;;  %s697_s2 = inlined_call_operand.vmem [shape: f32[1,64], index: 2, kind: input, shape index: {}]   ;;  %s698_s3 = inlined_call_operand.hbm [shape: bf16[64,128], index: 3, kind: input, shape index: {}]   ;;  %s699_s4 = inlined_call_operand.vmem [shape: f32[1,128], index: 4, kind: input, shape index: {}]   ;;  %s700_s5 = inlined_call_operand.hbm [shape: bf16[128,256], index: 5, kind: input, shape index: {}]   ;;  %s701_s6 = inlined_call_operand.vmem [shape: f32[1,256], index: 6, kind: input, shape index: {}]   ;;  %s702_s7 = inlined_call_operand.hbm [shape: f32[8,256], index: 7, kind: output, shape index: {}]  }
   0x1   :  { %13 = vsyncpa [#allocation6], 0 }
   0x2   :  { %14 = vsyncpa [#allocation9], 0 }
   0x3   :  { %15 = vsyncpa [#allocation4], 0  ;;  %s619_s24 = smov [#allocation5]  }
   0x4   :  { %s31_s25 = sshll.u32 %s619_s24, 4  ;;  %s32_s25 = int_to_ptr.vmem [resolvable:$true] %s31_s25 }
   0x5   :  { %s519_s26 = scalar_lea.vmem %s32_s25, 128  ;;  %p524_p1 = scmp.lt.s32.totalorder %s32_s25, %s32_s25 }
   0x6   :  { %p520_p0 = scmp.ne.s32.totalorder %s32_s25, %s519_s26  ;;  %p525_p2 = scmp.lt.s32.totalorder %s519_s26, %s519_s26 }
   0x8   :  { %p526_p3 = por %p525_p2, %p524_p1 }
   0xa   :  { %p527_p4 = pnand %p526_p3, %p520_p0 }
   0xc   :  { %530 = shalt.err (!%p527_p4)
}
   0xd   :  { %s620_s27 = smov 64   ;;  %s621_s28 = smov 4  }
   0xe   :  { %37 = dma.hbm_to_vmem [thread:$0]  %s696_s1, 128, %s32_s25, [#allocation6], %s620_s27, %s620_s27, %s621_s28  }
   0xf   :  { %s622_s8 = smov [#allocation2]   ;;  %s623_s10 = smov [#allocation7]  }
  0x10   :  { %s22_s9 = sshll.u32 %s622_s8, 4  ;;  %s45_s11 = sshll.u32 %s623_s10, 4  ;;  %s23_s9 = int_to_ptr.vmem [resolvable:$true] %s22_s9  ;;  %s46_s11 = int_to_ptr.vmem [resolvable:$true] %s45_s11 }
  0x11   :  { %s539_s12 = scalar_lea.vmem %s23_s9, 64  ;;  %p544_p6 = scmp.lt.s32.totalorder %s23_s9, %s23_s9 }
  0x12   :  { %p540_p5 = scmp.ne.s32.totalorder %s23_s9, %s539_s12  ;;  %p545_p7 = scmp.lt.s32.totalorder %s539_s12, %s539_s12 }
  0x14   :  { %p546_p8 = por %p545_p7, %p544_p6 }
  0x16   :  { %p547_p9 = pnand %p546_p8, %p540_p5 }
  0x18   :  { %550 = shalt.err (!%p547_p9)
}
  0x19   :  { %25 = dma.hbm_to_vmem [thread:$0]  %s695_s0, 64, %s23_s9, [#allocation3]  }
  0x1a   :  { %s559_s15 = scalar_lea.vmem %s46_s11, 512  ;;  %p564_p11 = scmp.lt.s32.totalorder %s46_s11, %s46_s11 }
  0x1b   :  { %p560_p10 = scmp.ne.s32.totalorder %s46_s11, %s559_s15  ;;  %p565_p12 = scmp.lt.s32.totalorder %s559_s15, %s559_s15 }
  0x1d   :  { %p566_p13 = por %p565_p12, %p564_p11 }
  0x1f   :  { %p567_p0 = pnand %p566_p13, %p560_p10 }
  0x21   :  { %570 = shalt.err (!%p567_p0)
}
  0x22   :  { %51 = dma.hbm_to_vmem [thread:$0]  %s698_s3, 512, %s46_s11, [#allocation6], %s620_s27, %s620_s27, %s621_s28  }
  0x23   :  { %s624_s17 = smov [#allocation8]  }
  0x24   :  { %s59_s18 = sshll.u32 %s624_s17, 4  ;;  %s60_s18 = int_to_ptr.vmem [resolvable:$true] %s59_s18 }
  0x25   :  { %s579_s19 = scalar_lea.vmem %s60_s18, 2048  ;;  %p584_p2 = scmp.lt.s32.totalorder %s60_s18, %s60_s18 }
  0x26   :  { %p580_p1 = scmp.ne.s32.totalorder %s60_s18, %s579_s19  ;;  %p585_p3 = scmp.lt.s32.totalorder %s579_s19, %s579_s19 }
  0x28   :  { %p586_p4 = por %p585_p3, %p584_p2 }
  0x2a   :  { %p587_p5 = pnand %p586_p4, %p580_p1 }
  0x2c   :  { %590 = shalt.err (!%p587_p5)
}
  0x2d   :  { %s625_s0 = smov 128   ;;  %s626_s20 = smov 8  }
  0x2e   :  { %65 = dma.hbm_to_vmem [thread:$0]  %s700_s5, 2048, %s60_s18, [#allocation9], %s625_s0, %s625_s0, %s626_s20  }
  0x2f   :  { %611 = dma.done.wait [#allocation3], 64  }
  0x30   :  { %612 = vsyncadd [#allocation3], 4294967232 }
  0x31   :  { %613 = dma.done.wait [#allocation6], 640  }
  0x32   :  { %614 = vsyncadd [#allocation6], 4294966656 }
  0x33   :  { %615 = dma.done.wait [#allocation9], 2048  }
  0x34   :  { %616 = vsyncadd [#allocation9], 4294965248  ;;  %v627_v0 = vmov 0.0   ;;  %vm628_vm0 = vmmov 0   ;;  %v476_v1 = vld [vmem:[#allocation5] sm:$0xff]   ;;  %vm97_vm1 = vcmask 130048   ;;  %v257_v50 = vlaneseq }
  0x35   :  { %446 = vmatprep.subr.bf16.mxu1 %v627_v0  ;;  %448 = vmatprep.mubr.msk.bf16.mxu1 %vm628_vm0, %v627_v0  ;;  %v81_v2 = vld [vmem:[#allocation2] sm:$0xf]  ;;  %v477_v3 = vld [vmem:[#allocation7 + $0x18] sm:$0xff]   ;;  %v479_v5 = vld [vmem:[#allocation7 + $0x8] sm:$0xff]   ;;  %vm188_vm3 = vcmask 523264   ;;  %v629_v36 = vmov 0  }
  0x36   :  { %447 = vmatpush3.bf16.msra.mxu1 %v476_v1  ;;  %v478_v4 = vld [vmem:[#allocation7 + $0x10] sm:$0xff]   ;;  %v480_v6 = vld [vmem:[#allocation7] sm:$0xff]   ;;  %379 = vmatprep.mubr.bf16.mxu0 %v629_v36  ;;  %v258_v51 = vshrl.u32 %v257_v50, 7  ;;  %s630_s25 = smov [#allocation10]  }
  0x37   :  { %452 = vmatprep.subr.bf16.mxu1 %v627_v0  ;;  %v413_v7 = vld [vmem:[%s697_s2] ss:$0 sm:$0xff]  ;;  %v483_v21 = vld [vmem:[#allocation8 + $0x70] ss:$8 sps:$4 sm:$0xff]   ;;  %v484_v22 = vld [vmem:[#allocation8 + $0x64] ss:$8 sps:$4 sm:$0xff]  }
  0x38   :  { %v481_v20 = vld [vmem:[#allocation8 + $0x74] ss:$8 sps:$4 sm:$0xff]   ;;  %v486_v23 = vld [vmem:[#allocation8 + $0x60] ss:$8 sps:$4 sm:$0xff]   ;;  %v489_v25 = vld [vmem:[#allocation8 + $0x50] ss:$8 sps:$4 sm:$0xff]  }
  0x39   :  { %449 = vmatmul.mubr.msk.bf16.vlgmr.msra.gmra.mxu1 %vm97_vm1, %v81_v2  ;;  %347 = vmatprep.subr.bf16.mxu0 %v481_v20  ;;  %v487_v24 = vld [vmem:[#allocation8 + $0x54] ss:$8 sps:$4 sm:$0xff]   ;;  %v490_v26 = vld [vmem:[#allocation8 + $0x44] ss:$8 sps:$4 sm:$0xff]   ;;  %v492_v27 = vld [vmem:[#allocation8 + $0x40] ss:$8 sps:$4 sm:$0xff]  }
  0x3a   :  { %460 = vmatprep.mubr.msk.bf16.mxu1 %vm628_vm0, %v627_v0  ;;  %453 = vmatpush3.bf16.msra.mxu1 %v477_v3  ;;  %v493_v28 = vld [vmem:[#allocation8 + $0x34] ss:$8 sps:$4 sm:$0xff]   ;;  %v495_v29 = vld [vmem:[#allocation8 + $0x30] ss:$8 sps:$4 sm:$0xff]   ;;  %v496_v30 = vld [vmem:[#allocation8 + $0x24] ss:$8 sps:$4 sm:$0xff]  }
  0x3b   :  { %454 = vmatprep.subr.bf16.mxu1 %v627_v0  ;;  %348 = vmatpush1.bf16.msra.mxu0 %v483_v21  ;;  %v498_v31 = vld [vmem:[#allocation8 + $0x20] ss:$8 sps:$4 sm:$0xff]   ;;  %v499_v32 = vld [vmem:[#allocation8 + $0x14] ss:$8 sps:$4 sm:$0xff]   ;;  %v501_v33 = vld [vmem:[#allocation8 + $0x10] ss:$8 sps:$4 sm:$0xff]  }
  0x3c   :  { %349 = vmatprep.subr.bf16.mxu0 %v484_v22  ;;  %v502_v34 = vld [vmem:[#allocation8 + $0x4] ss:$8 sps:$4 sm:$0xff]   ;;  %v504_v35 = vld [vmem:[#allocation8] ss:$8 sps:$4 sm:$0xff]   ;;  %v417_v37 = vld [vmem:[%s699_s4] ss:$0 sm:$0xff] }
  0x3d   :  { %v259_v52 = vsub.s32 0, %v258_v51  ;;  %v255_v53 = vld [vmem:[%s701_s6] sm:$0x3]  ;;  %v263_v54 = vsub.s32 1, %v258_v51  ;;  %s402_s26 = sshll.u32 %s630_s25, 4  ;;  %s403_s26 = int_to_ptr.vmem [resolvable:$true] %s402_s26 }
  0x3e   :  { %455 = vmatpush3.bf16.msra.mxu1 %v478_v4  ;;  %s591_s6 = scalar_lea.vmem %s403_s26, 256  ;;  %p596_p7 = scmp.lt.s32.totalorder %s403_s26, %s403_s26 }
  0x3f   :  { %456 = vmatprep.subr.bf16.mxu1 %v627_v0  ;;  %350 = vmatpush1.bf16.msra.mxu0 %v486_v23  ;;  %v260_v55 = vrot.slane %v255_v53, %v259_v52  ;;  %v264_v56 = vrot.slane %v255_v53, %v263_v54  ;;  %p592_p6 = scmp.ne.s32.totalorder %s403_s26, %s591_s6  ;;  %p597_p8 = scmp.lt.s32.totalorder %s591_s6, %s591_s6 }
  0x40   :  { %351 = vmatprep.subr.bf16.mxu0 %v487_v24 }
  0x41   :  { %p598_p9 = por %p597_p8, %p596_p7 }
  0x42   :  { %457 = vmatpush3.bf16.msra.mxu1 %v479_v5 }
  0x43   :  { %458 = vmatprep.subr.bf16.mxu1 %v627_v0  ;;  %352 = vmatpush1.bf16.msra.mxu0 %v489_v25  ;;  %p599_p10 = pnand %p598_p9, %p592_p6 }
  0x44   :  { %353 = vmatprep.subr.bf16.mxu0 %v490_v26 }
  0x46   :  { %459 = vmatpush3.bf16.msra.mxu1 %v480_v6 }
  0x47   :  { %354 = vmatpush1.bf16.msra.mxu0 %v492_v27 }
  0x48   :  { %355 = vmatprep.subr.bf16.mxu0 %v493_v28 }
  0x4b   :  { %356 = vmatpush1.bf16.msra.mxu0 %v495_v29 }
  0x4c   :  { %357 = vmatprep.subr.bf16.mxu0 %v496_v30 }
  0x4f   :  { %358 = vmatpush1.bf16.msra.mxu0 %v498_v31 }
  0x50   :  { %359 = vmatprep.subr.bf16.mxu0 %v499_v32 }
  0x53   :  { %360 = vmatpush1.bf16.msra.mxu0 %v501_v33 }
  0x54   :  { %361 = vmatprep.subr.bf16.mxu0 %v502_v34 }
  0x57   :  { %362 = vmatpush1.bf16.msra.mxu0 %v504_v35 }
  0xf9   :  { %v135_v8 = vpop.f32.mrf.mxu1 }
  0xfa   :  { %v136_v9 = vadd.f32 %v413_v7, %v135_v8 }
  0xfb   :  { %v450_v10 = vpop.f32.mrf.mxu1 }
  0xfc   :  { %v142_v11 = vmin.f32 %v136_v9, 0.0  ;;  %vm141_vm2 = vcmp.gt.f32.partialorder %v136_v9, 0.0 }
  0xfd   :  { %v138_v12 = vpop.f32.mrf.mxu1 }
  0xfe   :  { %v143_v13 = vmul.f32 1.442695, %v142_v11 }
  0xff   :  { %v451_v14 = vpop.f32.mrf.mxu1 }
 0x100   :  { %505 = vpow2.f32 %v143_v13 }
 0x10d   :  { %v506_v15 = vpop.eup %505 }
 0x10e   :  { %v416_v16 = vadd.f32 -1.0, %v506_v15 }
 0x110   :  { %v146_v17 = vmul.f32 0.5, %v416_v16 }
 0x112   :  { %v147_v18 = vsel %vm141_vm2, %v136_v9, %v146_v17 }
 0x113   :  { %v148_v19 = vpack.c.bf16 %v147_v18, %v147_v18 }
 0x115   :  { %461 = vmatmul.mubr.msk.bf16.vlgmr.msra.gmra.mxu1 %vm188_vm3, %v148_v19 }
 0x1d5   :  { %v226_v38 = vpop.f32.mrf.mxu1 }
 0x1d6   :  { %v227_v39 = vadd.f32 %v417_v37, %v226_v38 }
 0x1d7   :  { %v462_v40 = vpop.f32.mrf.mxu1 }
 0x1d8   :  { %v232_v41 = vsub.f32 0.0, %v227_v39 }
 0x1d9   :  { %v229_v42 = vpop.f32.mrf.mxu1 }
 0x1da   :  { %v233_v43 = vmul.f32 1.442695, %v232_v41 }
 0x1db   :  { %v463_v44 = vpop.f32.mrf.mxu1 }
 0x1dc   :  { %507 = vpow2.f32 %v233_v43 }
 0x1e9   :  { %v508_v45 = vpop.eup %507 }
 0x1ea   :  { %v235_v46 = vadd.f32 1.0, %v508_v45 }
 0x1ec   :  { %509 = vrcp.f32 %v235_v46 }
 0x1f9   :  { %v510_v47 = vpop.eup %509 }
 0x1fa   :  { %v237_v48 = vmul.f32 %v510_v47, %v227_v39 }
 0x1fc   :  { %v238_v49 = vpack.c.bf16 %v237_v48, %v237_v48 }
 0x1fe   :  { %380 = vmatmul.mubr.bf16.vlgmr.msra.gmra.mxu0 %v238_v49 }
 0x2be   :  { %v381_v57 = vpop.f32.mrf.mxu0 }
 0x2bf   :  { %v382_v58 = vadd.f32 %v381_v57, %v260_v55 }
 0x2c0   :  { %v383_v59 = vpop.f32.mrf.mxu0 }
 0x2c1   :  { %vm388_vm4 = vcmp.gt.f32.partialorder %v382_v58, 0.0  ;;  %v390_v60 = vmul.f32 0.01, %v382_v58  ;;  %v384_v61 = vadd.f32 %v383_v59, %v264_v56 }
 0x2c2   :  { %v385_v62 = vpop.f32.mrf.mxu0 }
 0x2c3   :  { %vm389_vm5 = vcmp.gt.f32.partialorder %v384_v61, 0.0  ;;  %v391_v63 = vmul.f32 0.01, %v384_v61  ;;  %v392_v0 = vsel %vm388_vm4, %v382_v58, %v390_v60 }
 0x2c4   :  { %v386_v1 = vpop.f32.mrf.mxu0  ;;  %394 = vst [vmem:[#allocation10] sm:$0xff] %v392_v0 }
 0x2c5   :  { %v393_v2 = vsel %vm389_vm5, %v384_v61, %v391_v63 }
 0x2c6   :  { %395 = vst [vmem:[#allocation10 + $0x8] sm:$0xff] %v393_v2 }
 0x2c7   :  { %602 = shalt.err (!%p599_p10)
}
 0x2c8   :  { %405 = dma.vmem_to_hbm [thread:$0]  %s403_s26, 256, %s702_s7, [#allocation4]  }
 0x2c9   :  { %617 = dma.done.wait [#allocation4], 256  }
 0x2ca   :  { %618 = vsyncadd [#allocation4], 4294967040 }
 0x2cb   :  { %409 = vsyncpa [#allocation3], 1 }
 0x2cc   :  { %410 = vsyncpa [#allocation6], 1 }
 0x2cd   :  { %411 = vsyncpa [#allocation9], 1 }
 0x2ce   :  { %412 = vsyncpa [#allocation4], 1 }

</bundles_post_ra>
